<compile_context>
chip_gen: v7x
topology: tpu7x:2x2x1
jax: 0.10.0
libtpu: 0.0.40
codegen_flags: <defaults>
</compile_context>

<pallas_src>
import jax
import jax.numpy as jnp
from jax import lax
from jax.experimental import pallas as pl
from jax.experimental.pallas import tpu as pltpu


def head_kernel(p_ref, w1_ref, b1_ref, w2_ref, b2_ref, o_ref):
    """Fused (3x3 conv as a single im2col matmul) + LeakyReLU + 1x1 conv.

    p_ref : (1, 9*Cin, TM)   im2col patches, pixels on the lane axis
    w1_ref: (Cout, 9*Cin)    3x3 conv weights, output-major (transposed)
    b1_ref: (Cout, 1)        3x3 conv bias (broadcast over pixels)
    w2_ref: (Cout, Cout)     1x1 conv weights, output-major (transposed)
    b2_ref: (Cout, 1)        1x1 conv bias
    o_ref : (1, Cout, TM)    output tile (channel-major, lane-dense pixels)
    """
    p = p_ref[0]                                                    # (9*Cin, TM)
    h = jnp.dot(w1_ref[...], p, preferred_element_type=jnp.float32)
    h = h + b1_ref[...]
    h = jnp.where(h > 0, h, 0.01 * h)                               # LeakyReLU(0.01)
    out = jnp.dot(w2_ref[...], h, preferred_element_type=jnp.float32)
    out = out + b2_ref[...]
    o_ref[0] = out.astype(o_ref.dtype)


def _pick_m_tile(num_pixels, batch):
    """Pick a lane-dense pixel tile: multiple of 128, capped so VMEM per
    double-buffered block stays small, and split so there are >= 2 grid steps
    when the batch is tiny (keeps both v7x TensorCores busy)."""
    if num_pixels % 128 != 0:
        return num_pixels  # full extent is always a legal block dim
    cap = 2048
    if batch == 1 and num_pixels >= 256 and (num_pixels // 2) % 128 == 0:
        cap = min(cap, num_pixels // 2)
    for t in (2048, 1024, 512, 256, 128):
        if t <= cap and num_pixels % t == 0:
            return t
    return num_pixels


def head_forward(x_nchw, w1, b1, w2, b2):
    """x_nchw: (B, Cin, H, W). w1: (3,3,Cin,Cout) HWIO. w2: (Cin2, Cout) for the
    1x1 conv. Returns (B, Cout, H, W), matching the PyTorch module."""
    B, Cin, H, W = x_nchw.shape
    Cout = w1.shape[-1]
    M = H * W
    K9 = 9 * Cin

    # --- wrapper-side im2col, channel-major (tap-major / channel-minor on K9) ---
    # TODO(synk): for very large images, do the 3x3 tap shifts in-kernel with
    # pltpu.roll instead of a 9x im2col expansion in HBM.
    xp = jnp.pad(x_nchw, ((0, 0), (0, 0), (1, 1), (1, 1)))          # zero 'same' pad
    taps = [xp[:, :, dy:dy + H, dx:dx + W] for dy in range(3) for dx in range(3)]
    patches = jnp.concatenate(taps, axis=1).reshape(B, K9, M)       # (B, 9*Cin, H*W)

    # Output-major (transposed) weights so the pixel axis stays on the lanes.
    w1t = w1.reshape(K9, Cout).T                                    # (Cout, 9*Cin)
    w2t = w2.T                                                      # (Cout, Cout)
    b1c = b1.reshape(Cout, 1)
    b2c = b2.reshape(Cout, 1)

    TM = _pick_m_tile(M, B)
    grid = (B, M // TM)

    out_cm = pl.pallas_call(
        head_kernel,
        out_shape=jax.ShapeDtypeStruct((B, Cout, M), x_nchw.dtype),
        grid_spec=pltpu.PrefetchScalarGridSpec(
            num_scalar_prefetch=0,
            grid=grid,
            in_specs=[
                pl.BlockSpec((1, K9, TM), lambda b, m: (b, 0, m)),
                pl.BlockSpec((Cout, K9), lambda b, m: (0, 0)),
                pl.BlockSpec((Cout, 1), lambda b, m: (0, 0)),
                pl.BlockSpec((Cout, Cout), lambda b, m: (0, 0)),
                pl.BlockSpec((Cout, 1), lambda b, m: (0, 0)),
            ],
            out_specs=pl.BlockSpec((1, Cout, TM), lambda b, m: (b, 0, m)),
        ),
        compiler_params=pltpu.CompilerParams(
            dimension_semantics=("parallel", "parallel"),
            vmem_limit_bytes=32 * 1024 * 1024,
        ),
    )(patches, w1t, b1c, w2t, b2c)

    # Already channel-major -> NCHW is a free metadata reshape (no transpose).
    return out_cm.reshape(B, Cout, H, W)


def head_reference(x_nchw, w1, b1, w2, b2):
    """Pure-JAX reference (lax convolutions) for correctness checking."""
    Cout = w1.shape[-1]
    x = jnp.transpose(x_nchw, (0, 2, 3, 1))
    y = lax.conv_general_dilated(
        x, w1, window_strides=(1, 1), padding="SAME",
        dimension_numbers=("NHWC", "HWIO", "NHWC"))
    y = y + b1
    y = jnp.where(y > 0, y, 0.01 * y)
    y = lax.conv_general_dilated(
        y, w2.reshape(1, 1, Cout, Cout), window_strides=(1, 1), padding="SAME",
        dimension_numbers=("NHWC", "HWIO", "NHWC"))
    y = y + b2
    return jnp.transpose(y, (0, 3, 1, 2))


if __name__ == "__main__":
    # Head(inch=4, outch=32) on a (2, 4, 16, 16) NCHW input.
    B, Cin, H, W = 2, 4, 16, 16
    Cout = 32

    key = jax.random.PRNGKey(0)
    kx, kw1, kb1, kw2, kb2 = jax.random.split(key, 5)

    x = jax.random.normal(kx, (B, Cin, H, W), dtype=jnp.float32)
    # Deterministic synthetic parameters (HWIO layout for the 3x3 conv).
    w1 = jax.random.normal(kw1, (3, 3, Cin, Cout), dtype=jnp.float32) * 0.1
    b1 = jax.random.normal(kb1, (Cout,), dtype=jnp.float32) * 0.1
    w2 = jax.random.normal(kw2, (Cout, Cout), dtype=jnp.float32) * 0.1
    b2 = jax.random.normal(kb2, (Cout,), dtype=jnp.float32) * 0.1

    out = jax.jit(head_forward)(x, w1, b1, w2, b2)
    out = jax.block_until_ready(out)

    ref = head_reference(x, w1, b1, w2, b2)
    assert out.shape == (B, Cout, H, W)
    assert jnp.allclose(out, ref, atol=1e-3, rtol=1e-3), "mismatch vs reference"

    print("KERNEL_OK")
</pallas_src>

<mosaic_0001>
module attributes {stable_mosaic.version = 11 : i64} {
  func.func @head_kernel(%arg0: i32, %arg1: i32, %arg2: memref<1x36x256xf32, #tpu.memory_space<vmem>>, %arg3: memref<32x36xf32, #tpu.memory_space<vmem>>, %arg4: memref<32x1xf32, #tpu.memory_space<vmem>>, %arg5: memref<32x32xf32, #tpu.memory_space<vmem>>, %arg6: memref<32x1xf32, #tpu.memory_space<vmem>>, %arg7: memref<1x32x256xf32, #tpu.memory_space<vmem>>) attributes {dimension_semantics = [#tpu.dimension_semantics<parallel>, #tpu.dimension_semantics<parallel>], iteration_bounds = array<i64: 2, 1>, scalar_prefetch = 0 : i64, scratch_operands = 0 : i64, tpu.core_type = #tpu.core_type<tc>, window_params = [{transform_indices = @transform_0, window_bounds = array<i64: 1, 36, 256>}, {pipeline_mode = #tpu.pipeline_mode<synchronous>, transform_indices = @transform_1, window_bounds = array<i64: 32, 36>}, {pipeline_mode = #tpu.pipeline_mode<synchronous>, transform_indices = @transform_2, window_bounds = array<i64: 32, 1>}, {pipeline_mode = #tpu.pipeline_mode<synchronous>, transform_indices = @transform_3, window_bounds = array<i64: 32, 32>}, {pipeline_mode = #tpu.pipeline_mode<synchronous>, transform_indices = @transform_4, window_bounds = array<i64: 32, 1>}, {transform_indices = @transform_5, window_bounds = array<i64: 1, 32, 256>}]} {
    %c0 = arith.constant 0 : index
    %c0_0 = arith.constant 0 : index
    %c0_1 = arith.constant 0 : index
    %0 = vector.load %arg2[%c0, %c0_0, %c0_1] : memref<1x36x256xf32, #tpu.memory_space<vmem>>, vector<1x36x256xf32>
    %1 = vector.shape_cast %0 : vector<1x36x256xf32> to vector<36x256xf32>
    %c0_2 = arith.constant 0 : index
    %c0_3 = arith.constant 0 : index
    %2 = vector.load %arg3[%c0_2, %c0_3] : memref<32x36xf32, #tpu.memory_space<vmem>>, vector<32x36xf32>
    %cst = arith.constant dense<0.000000e+00> : vector<32x256xf32>
    %3 = tpu.matmul %2, %1, %cst {dimension_numbers = #tpu.dot_dimension_numbers<[1], [0], [0], [1], [0, 0, 1, 1], [], []>} : vector<32x36xf32>, vector<36x256xf32>, vector<32x256xf32> -> vector<32x256xf32>
    %c0_4 = arith.constant 0 : index
    %c0_5 = arith.constant 0 : index
    %4 = vector.load %arg4[%c0_4, %c0_5] : memref<32x1xf32, #tpu.memory_space<vmem>>, vector<32x1xf32>
    %5 = vector.broadcast %4 : vector<32x1xf32> to vector<32x256xf32>
    %6 = arith.addf %3, %5 : vector<32x256xf32>
    %cst_6 = arith.constant 0.000000e+00 : f32
    %7 = vector.broadcast %cst_6 : f32 to vector<32x256xf32>
    %8 = arith.cmpf ogt, %6, %7 : vector<32x256xf32>
    %cst_7 = arith.constant 0.00999999977 : f32
    %9 = vector.broadcast %cst_7 : f32 to vector<32x256xf32>
    %10 = arith.mulf %9, %6 : vector<32x256xf32>
    %11 = arith.select %8, %6, %10 : vector<32x256xi1>, vector<32x256xf32>
    %c0_8 = arith.constant 0 : index
    %c0_9 = arith.constant 0 : index
    %12 = vector.load %arg5[%c0_8, %c0_9] : memref<32x32xf32, #tpu.memory_space<vmem>>, vector<32x32xf32>
    %cst_10 = arith.constant dense<0.000000e+00> : vector<32x256xf32>
    %13 = tpu.matmul %12, %11, %cst_10 {dimension_numbers = #tpu.dot_dimension_numbers<[1], [0], [0], [1], [0, 0, 1, 1], [], []>} : vector<32x32xf32>, vector<32x256xf32>, vector<32x256xf32> -> vector<32x256xf32>
    %c0_11 = arith.constant 0 : index
    %c0_12 = arith.constant 0 : index
    %14 = vector.load %arg6[%c0_11, %c0_12] : memref<32x1xf32, #tpu.memory_space<vmem>>, vector<32x1xf32>
    %15 = vector.broadcast %14 : vector<32x1xf32> to vector<32x256xf32>
    %16 = arith.addf %13, %15 : vector<32x256xf32>
    %c0_13 = arith.constant 0 : index
    %c0_14 = arith.constant 0 : index
    %c0_15 = arith.constant 0 : index
    %17 = vector.load %arg7[%c0_13, %c0_14, %c0_15] : memref<1x32x256xf32, #tpu.memory_space<vmem>>, vector<1x32x256xf32>
    %18 = vector.shape_cast %17 : vector<1x32x256xf32> to vector<32x256xf32>
    %19 = vector.shape_cast %16 : vector<32x256xf32> to vector<1x32x256xf32>
    tpu.vector_store %arg7[%c0_13, %c0_14, %c0_15], %19 {strides = array<i32>} : memref<1x32x256xf32, #tpu.memory_space<vmem>>, vector<1x32x256xf32>,
    return
  }
  func.func @transform_0(%arg0: i32, %arg1: i32) -> (i32, i32, i32) {
    %c0_i32 = arith.constant 0 : i32
    %c0_i32_0 = arith.constant 0 : i32
    return %arg0, %c0_i32, %arg1 : i32, i32, i32
  }
  func.func @transform_1(%arg0: i32, %arg1: i32) -> (i32, i32) {
    %c0_i32 = arith.constant 0 : i32
    %c0_i32_0 = arith.constant 0 : i32
    %c0_i32_1 = arith.constant 0 : i32
    return %c0_i32, %c0_i32_0 : i32, i32
  }
  func.func @transform_2(%arg0: i32, %arg1: i32) -> (i32, i32) {
    %c0_i32 = arith.constant 0 : i32
    %c0_i32_0 = arith.constant 0 : i32
    %c0_i32_1 = arith.constant 0 : i32
    return %c0_i32, %c0_i32_0 : i32, i32
  }
  func.func @transform_3(%arg0: i32, %arg1: i32) -> (i32, i32) {
    %c0_i32 = arith.constant 0 : i32
    %c0_i32_0 = arith.constant 0 : i32
    %c0_i32_1 = arith.constant 0 : i32
    return %c0_i32, %c0_i32_0 : i32, i32
  }
  func.func @transform_4(%arg0: i32, %arg1: i32) -> (i32, i32) {
    %c0_i32 = arith.constant 0 : i32
    %c0_i32_0 = arith.constant 0 : i32
    %c0_i32_1 = arith.constant 0 : i32
    return %c0_i32, %c0_i32_0 : i32, i32
  }
  func.func @transform_5(%arg0: i32, %arg1: i32) -> (i32, i32, i32) {
    %c0_i32 = arith.constant 0 : i32
    %c0_i32_0 = arith.constant 0 : i32
    return %arg0, %c0_i32, %arg1 : i32, i32, i32
  }
}

</mosaic_0001>

<bundles_post_ra>
// kernel: head_forward.1
= control target key start
LH: loop header
LB: loop body
LE: loop exit
PB: predicated region body
PF: predicated region fallthrough
CT: control target
= control target key end

     0   :  { %s782_s18 = smov 0   ;;  %s784_s19 = smov 0   ;;  %s875_s0 = inlined_call_operand.vmem [shape: f32[2,36,256], index: 0, kind: input, shape index: {}]   ;;  %s876_s1 = inlined_call_operand.vmem [shape: f32[32,36], index: 1, kind: input, shape index: {}]   ;;  %s877_s2 = inlined_call_operand.vmem [shape: f32[32,1], index: 2, kind: input, shape index: {}]   ;;  %s878_s3 = inlined_call_operand.vmem [shape: f32[32,32], index: 3, kind: input, shape index: {}]   ;;  %s879_s4 = inlined_call_operand.vmem [shape: f32[32,1], index: 4, kind: input, shape index: {}]   ;;  %s880_s5 = inlined_call_operand.vmem [shape: f32[2,32,256], index: 5, kind: output, shape index: {}]  }
   0x1   :  { %s786_s20 = smov 0  }
   0x2 LB: > { %s27_s21 = sadd.s32 1, %s744_s19  ;;  %p664_p0 = scmp.ge.s32.totalorder %s748_s20, 1  ;;  %s748_s20 = sphi %s786_s20, %s15_s20   ;;  %s744_s19 = sphi %s784_s19, %s882_s19   ;;  %s740_s18 = sphi %s782_s18, %s881_s18  }
   0x3   : > { %p29_p1 = scmp.ge.s32.totalorder %s27_s21, 2  ;;  %p208_p2 = scmp.lt.s32.totalorder %s748_s20, 3 }
   0x5   : > { %s884_s21 = smov (%p29_p1, %s27_s21), 0  ;;  %p209_p3 = pnand %p664_p0, %p208_p2 }
   0x6   : > { %p245_p4 = scmp.lt.s32.totalorder (!%p209_p3), %s740_s18, 1  ;;  %v750_v0 = vmov (!%p209_p3), 0.0   ;;  %v278_v1 = vld [vmem:[%s877_s2] sm:$0xff] (!%p209_p3)  ;;  %v751_v2 = vmov (!%p209_p3), 0   ;;  %v280_v3 = vld [vmem:[%s877_s2 + $0x10] sm:$0xff] (!%p209_p3)  ;;  %v279_v4 = vld [vmem:[%s877_s2 + $0x8] sm:$0xff] (!%p209_p3) }
   0x7   : > { %212 = sbr.rel (%p209_p3) target bundleno = 495 (0x1ef), region = 40  ;;  %386 = vmatprep.mubr.f32.mxu0 (!%p209_p3), %v750_v0  ;;  %540 = vmatprep.mubr.f32.mxu1 (!%p209_p3), %v750_v0  ;;  %v281_v5 = vld [vmem:[%s877_s2 + $0x18] sm:$0xff] (!%p209_p3)  ;;  %v439_v6 = vld [vmem:[%s879_s4] sm:$0xff] (!%p209_p3)  ;;  %v440_v18 = vld [vmem:[%s879_s4 + $0x8] sm:$0xff] (!%p209_p3)  ;;  %vm315_vm0 = vcmask (!%p209_p3), 1043456   ;;  %vm302_vm1 = vcmask (!%p209_p3), 293888  }
   0x8   : > { %724 = vset.pattern.permute.xlu0 (!%p209_p3), %v751_v2  ;;  %725 = vset.pattern.permute.xlu1 (!%p209_p3), %v751_v2  ;;  %v441_v20 = vld [vmem:[%s879_s4 + $0x10] sm:$0xff] (!%p209_p3)  ;;  %v442_v22 = vld [vmem:[%s879_s4 + $0x18] sm:$0xff] (!%p209_p3)  ;;  %v274_v24 = vld [vmem:[%s876_s1] sm:$0xff] (!%p209_p3)  ;;  %vm463_vm10 = vcmask (!%p209_p3), 261120  }
   0x9   : > { %284 = vperm.xlu0 (!%p209_p3), %724, %v278_v1   ;;  %294 = vperm.xlu1 (!%p209_p3), %725, %v280_v3   ;;  %v275_v25 = vld [vmem:[%s876_s1 + $0x8] sm:$0xff] (!%p209_p3)  ;;  %v276_v26 = vld [vmem:[%s876_s1 + $0x10] sm:$0xff] (!%p209_p3)  ;;  %v277_v27 = vld [vmem:[%s876_s1 + $0x18] sm:$0xff] (!%p209_p3) }
   0xd   : > { %289 = vperm.xlu0 (!%p209_p3), %724, %v279_v4   ;;  %299 = vperm.xlu1 (!%p209_p3), %725, %v281_v5   ;;  %v435_v5 = vld [vmem:[%s878_s3] sm:$0xff] (!%p209_p3) }
   0xe   : > { %s886_s18 = smov (!%p245_p4, %s740_s18), 1 }
   0xf   : > { %s697_s26 = smul.u32 80, %s886_s18  ;;  %s680_s12 = sshll.u32 %s886_s18, 6 }
  0x10   : > { %s262_s15 = scalar_lea.vmem %s880_s5, %s680_s12 }
  0x11   : > { %s252_s8 = scalar_lea.vmem %s875_s0, %s697_s26  ;;  %445 = vperm.xlu0 %724, %v439_v6   ;;  %450 = vperm.xlu1 %725, %v440_v18   ;;  %v436_v6 = vld [vmem:[%s878_s3 + $0x8] sm:$0xff] }
  0x12   : > { %v265_v7 = vld [vmem:[%s252_s8 + $0x8] sm:$0xff]  ;;  %v267_v8 = vld [vmem:[%s252_s8 + $0x18] sm:$0xff]  ;;  %v264_v9 = vld [vmem:[%s252_s8] sm:$0xff] }
  0x13   : > { %v681_v10 = vpack.c.bf16 %v267_v8, %v265_v7  ;;  %v266_v11 = vld [vmem:[%s252_s8 + $0x10] sm:$0xff]  ;;  %v269_v12 = vld [vmem:[%s252_s8 + $0x28] sm:$0xff]  ;;  %v271_v13 = vld [vmem:[%s252_s8 + $0x38] sm:$0xff] }
  0x14   : > { %v683_v14 = vpack.c.bf16 %v266_v11, %v264_v9  ;;  %v685_v15 = vpack.c.bf16 %v271_v13, %v269_v12  ;;  %v268_v16 = vld [vmem:[%s252_s8 + $0x20] sm:$0xff]  ;;  %v270_v17 = vld [vmem:[%s252_s8 + $0x30] sm:$0xff]  ;;  %v273_v21 = vld [vmem:[%s252_s8 + $0x48] sm:$0xf] }
  0x15   : > { %682 = vmatprep.subr.bf16.mxu0 %v681_v10  ;;  %v687_v19 = vpack.c.bf16 %v270_v17, %v268_v16  ;;  %455 = vperm.xlu0 %724, %v441_v20   ;;  %v272_v23 = vld [vmem:[%s252_s8 + $0x40] sm:$0xf]  ;;  %v437_v7 = vld [vmem:[%s878_s3 + $0x10] sm:$0xff]  ;;  %v438_v8 = vld [vmem:[%s878_s3 + $0x18] sm:$0xff] }
  0x16   : > { %684 = vmatpush1.bf16.msra.mxu0 %v683_v14  ;;  %460 = vperm.xlu1 %725, %v442_v22  }
  0x17   : > { %686 = vmatprep.subr.bf16.mxu0 %v685_v15 }
  0x1a   : > { %688 = vmatpush1.bf16.msra.mxu0 %v687_v19 }
  0x1b   : > { %668 = vmatprep.subr.msk.mxu0 %vm315_vm0, %v273_v21 }
  0x1e   : > { %669 = vmatpush1.msk.msra.mxu0 %vm315_vm0, %v272_v23 }
  0x1f   : > { %670 = vmatmul.mubr.msk.f32.vlgmr.msra.gmra.mrb[0].mxu0 %vm302_vm1, %v274_v24 }
  0x20   : > { %392 = vmatprep.mubr.f32.mxu0 %v750_v0 }
  0x23   : > { %671 = vmatmul.mubr.msk.f32.gmra.mrb[2].mxu0 %vm302_vm1, %v275_v25 }
  0x24   : > { %398 = vmatprep.mubr.f32.mxu0 %v750_v0 }
  0x27   : > { %672 = vmatmul.mubr.msk.f32.gmra.mrb[4].mxu0 %vm302_vm1, %v276_v26 }
  0x28   : > { %404 = vmatprep.mubr.f32.mxu0 %v750_v0 }
  0x2b   : > { %673 = vmatmul.mubr.msk.f32.gmra.mrb[6].mxu0 %vm302_vm1, %v277_v27 }
  0x88   : > { %v285_v28 = vpop.permute.xlu0 %284  ;;  %v295_v38 = vpop.permute.xlu1 %294 }
  0x8c   : > { %v290_v33 = vpop.permute.xlu0 %289  ;;  %v300_v53 = vpop.permute.xlu1 %299 }
  0x90   : > { %v446_v9 = vpop.permute.xlu0 %445  ;;  %v451_v14 = vpop.permute.xlu1 %450 }
  0x94   : > { %v456_v18 = vpop.permute.xlu0 %455 }
  0x95   : > { %v461_v23 = vpop.permute.xlu1 %460 }
  0xf2   : > { %v388_v29 = vpop.f32.mrb[0].mxu0 }
  0xf3   : > { %v389_v30 = vadd.f32 %v388_v29, %v285_v28  ;;  %v390_v31 = vpop.f32.mrb[1].mxu0 }
  0xf4   : > { %v391_v32 = vadd.f32 %v390_v31, %v285_v28 }
  0xf5   : > { %v419_v35 = vmul.f32 0.01, %v389_v30  ;;  %vm411_vm2 = vcmp.gt.f32.partialorder %v389_v30, 0.0 }
  0xf6   : > { %v394_v34 = vpop.f32.mrb[2].mxu0  ;;  %v420_v39 = vmul.f32 0.01, %v391_v32  ;;  %vm412_vm3 = vcmp.gt.f32.partialorder %v391_v32, 0.0 }
  0xf7   : > { %v395_v36 = vadd.f32 %v394_v34, %v290_v33  ;;  %v396_v37 = vpop.f32.mrb[3].mxu0  ;;  %v427_v46 = vsel %vm411_vm2, %v389_v30, %v419_v35 }
  0xf8   : > { %v397_v40 = vadd.f32 %v396_v37, %v290_v33  ;;  %v428_v49 = vsel %vm412_vm3, %v391_v32, %v420_v39 }
  0xf9   : > { %v421_v41 = vmul.f32 0.01, %v395_v36  ;;  %vm413_vm4 = vcmp.gt.f32.partialorder %v395_v36, 0.0 }
  0xfa   : > { %v422_v42 = vmul.f32 0.01, %v397_v40  ;;  %v400_v43 = vpop.f32.mrb[4].mxu0  ;;  %vm414_vm5 = vcmp.gt.f32.partialorder %v397_v40, 0.0 }
  0xfb   : > { %v401_v44 = vadd.f32 %v400_v43, %v295_v38  ;;  %v402_v45 = vpop.f32.mrb[5].mxu0  ;;  %v429_v47 = vsel %vm413_vm4, %v395_v36, %v421_v41 }
  0xfc   : > { %v403_v48 = vadd.f32 %v402_v45, %v295_v38  ;;  %v430_v50 = vsel %vm414_vm5, %v397_v40, %v422_v42  ;;  %v691_v51 = vpack.c.bf16 %v429_v47, %v427_v46 }
  0xfd   : > { %v689_v52 = vpack.c.bf16 %v430_v50, %v428_v49  ;;  %v423_v55 = vmul.f32 0.01, %v401_v44  ;;  %vm415_vm6 = vcmp.gt.f32.partialorder %v401_v44, 0.0 }
  0xfe   : > { %v406_v54 = vpop.f32.mrb[6].mxu0  ;;  %v424_v58 = vmul.f32 0.01, %v403_v48  ;;  %vm416_vm7 = vcmp.gt.f32.partialorder %v403_v48, 0.0 }
  0xff   : > { %v407_v56 = vadd.f32 %v406_v54, %v300_v53  ;;  %v408_v57 = vpop.f32.mrb[7].mxu0  ;;  %690 = vmatprep.subr.bf16.mxu1 %v689_v52  ;;  %v431_v62 = vsel %vm415_vm6, %v401_v44, %v423_v55 }
 0x100   : > { %v409_v59 = vadd.f32 %v408_v57, %v300_v53  ;;  %692 = vmatpush1.bf16.msra.mxu1 %v691_v51  ;;  %v432_v1 = vsel %vm416_vm7, %v403_v48, %v424_v58 }
 0x101   : > { %vm417_vm8 = vcmp.gt.f32.partialorder %v407_v56, 0.0  ;;  %v425_v60 = vmul.f32 0.01, %v407_v56 }
 0x102   : > { %vm418_vm9 = vcmp.gt.f32.partialorder %v409_v59, 0.0  ;;  %v426_v61 = vmul.f32 0.01, %v409_v59 }
 0x103   : > { %v433_v63 = vsel %vm417_vm8, %v407_v56, %v425_v60 }
 0x104   : > { %v434_v2 = vsel %vm418_vm9, %v409_v59, %v426_v61  ;;  %v695_v3 = vpack.c.bf16 %v433_v63, %v431_v62 }
 0x105   : > { %v693_v4 = vpack.c.bf16 %v434_v2, %v432_v1 }
 0x107   : > { %694 = vmatprep.subr.bf16.mxu1 %v693_v4 }
 0x108   : > { %696 = vmatpush1.bf16.msra.mxu1 %v695_v3 }
 0x10b   : > { %674 = vmatmul.mubr.msk.f32.vlgmr.msra.gmra.mrb[0].mxu1 %vm463_vm10, %v435_v5 }
 0x10c   : > { %546 = vmatprep.mubr.f32.mxu1 %v750_v0 }
 0x10f   : > { %675 = vmatmul.mubr.msk.f32.gmra.mrb[2].mxu1 %vm463_vm10, %v436_v6 }
 0x110   : > { %552 = vmatprep.mubr.f32.mxu1 %v750_v0 }
 0x113   : > { %676 = vmatmul.mubr.msk.f32.gmra.mrb[4].mxu1 %vm463_vm10, %v437_v7 }
 0x114   : > { %558 = vmatprep.mubr.f32.mxu1 %v750_v0 }
 0x117   : > { %677 = vmatmul.mubr.msk.f32.gmra.mrb[6].mxu1 %vm463_vm10, %v438_v8 }
 0x1de   : > { %v542_v10 = vpop.f32.mrb[0].mxu1 }
 0x1df   : > { %v543_v11 = vadd.f32 %v542_v10, %v446_v9  ;;  %v544_v12 = vpop.f32.mrb[1].mxu1 }
 0x1e0   : > { %v545_v13 = vadd.f32 %v544_v12, %v446_v9 }
 0x1e1   : > { %565 = vst [vmem:[%s262_s15] sm:$0xff] %v543_v11 }
 0x1e2   : > { %566 = vst [vmem:[%s262_s15 + $0x8] sm:$0xff] %v545_v13  ;;  %v548_v15 = vpop.f32.mrb[2].mxu1 }
 0x1e3   : > { %v549_v0 = vadd.f32 %v548_v15, %v451_v14  ;;  %v550_v16 = vpop.f32.mrb[3].mxu1 }
 0x1e4   : > { %v551_v17 = vadd.f32 %v550_v16, %v451_v14 }
 0x1e5   : > { %567 = vst [vmem:[%s262_s15 + $0x10] sm:$0xff] %v549_v0 }
 0x1e6   : > { %568 = vst [vmem:[%s262_s15 + $0x18] sm:$0xff] %v551_v17  ;;  %v554_v19 = vpop.f32.mrb[4].mxu1 }
 0x1e7   : > { %v555_v20 = vadd.f32 %v554_v19, %v456_v18  ;;  %v556_v21 = vpop.f32.mrb[5].mxu1 }
 0x1e8   : > { %v557_v22 = vadd.f32 %v556_v21, %v456_v18 }
 0x1e9   : > { %569 = vst [vmem:[%s262_s15 + $0x20] sm:$0xff] %v555_v20 }
 0x1ea   : > { %570 = vst [vmem:[%s262_s15 + $0x28] sm:$0xff] %v557_v22  ;;  %v560_v24 = vpop.f32.mrb[6].mxu1 }
 0x1eb   : > { %v561_v25 = vadd.f32 %v560_v24, %v461_v23  ;;  %v562_v26 = vpop.f32.mrb[7].mxu1 }
 0x1ec   : > { %v563_v27 = vadd.f32 %v562_v26, %v461_v23 }
 0x1ed   : > { %571 = vst [vmem:[%s262_s15 + $0x30] sm:$0xff] %v561_v25 }
 0x1ee   : > { %572 = vst [vmem:[%s262_s15 + $0x38] sm:$0xff] %v563_v27 }
 0x1ef PF: > { %s15_s20 = sadd.s32 1, %s748_s20   ;;  %s881_s18 = smov %s744_s19 }
 0x1f0   : > { %p12_p5 = scmp.ge.s32.totalorder %s15_s20, 4   ;;  %s882_s19 = smov %s884_s21 }
 0x1f2   :  { %14 = sbr.rel (!%p12_p5) target bundleno = 2 (0x2), region = 70 }

</bundles_post_ra>
